<compile_context>
chip_gen: v7x
topology: tpu7x:2x2x1
jax: 0.10.0
libtpu: 0.0.40
codegen_flags: <defaults>
</compile_context>

<pallas_src>
import functools

import jax
import jax.numpy as jnp
import numpy as np
from jax.experimental import pallas as pl
from jax.experimental.pallas import tpu as pltpu


# ----------------------------------------------------------------------------
# Fused kernel: per (batch b, layer-chunk lc) grid step
#   for each layer l in the chunk:
#       gathered = G[b] @ layers[l, b]             (out_s, S) @ (S, H)  bf16 MXU
#       acc[h]  += w[h, l] * gathered              (f32 VPU, per head)
#   out[:, b] += stack(acc)                        single RMW per grid step
# The output block (num_heads, out_s, H) is resident (f32 accumulator) across
# the layer-chunk axis; it is initialized (with [root] in row 0) at lc == 0.
# ----------------------------------------------------------------------------
def _fused_mix_gather_kernel(w_ref, gmat_ref, layers_ref, root_ref, out_ref,
                             *, num_layers, guard_tail):
    lc = pl.program_id(1)
    l_chunk = layers_ref.shape[0]
    num_heads, out_s, hidden = out_ref.shape

    # Init the resident accumulator once per batch; fold the learned [root]
    # embedding into row 0 here (row 0 of the gather matrix is all-zero, so
    # no layer contribution ever lands on it).
    @pl.when(lc == 0)
    def _init():
        out_ref[...] = jnp.zeros_like(out_ref)
        out_ref[:, 0:1, :] = jnp.broadcast_to(
            root_ref[...][None, :, :], (num_heads, 1, hidden))

    gmat = gmat_ref[...]                       # (out_s, S) bf16, exact 0/1

    # Accumulate the whole layer chunk into local f32 values, then issue a
    # SINGLE read-modify-write of the resident output block (one vst sequence
    # per grid step regardless of num_heads / l_chunk -> not store-bound on v5e).
    accs = [jnp.zeros((out_s, hidden), jnp.float32) for _ in range(num_heads)]
    for i in range(l_chunk):                   # static, small (<= num layers)
        l_glob = lc * l_chunk + i
        # One-hot gather of original-token rows: bf16 MXU matmul, f32 result.
        gathered = jnp.dot(gmat, layers_ref[i],
                           preferred_element_type=jnp.float32)   # (out_s, H)
        if guard_tail:
            # Last chunk may extend past the real layer count; discard it.
            gathered = jnp.where(l_glob < num_layers, gathered, 0.0)
        for h in range(num_heads):
            accs[h] = accs[h] + w_ref[h, l_glob] * gathered      # SMEM scalar * f32
    out_ref[...] += jnp.concatenate([a[None] for a in accs], axis=0)


def fused_mix_gather(embedding_layers, mix_weights, gmat, root_embedding,
                     *, l_chunk=None, vmem_budget_bytes=12 * 2**20):
    """embedding_layers: (L, B, S, H) f32 (cast to bf16 for streaming here)
       mix_weights:      (num_heads, L) f32   (gamma * softmax(params) per head)
       gmat:             (B, out_s_pad, S)    one-hot gather matrix, row 0 zero
       root_embedding:   (H,) f32
       returns           (num_heads, B, out_s_pad, H) f32
    """
    L, B, S, H = embedding_layers.shape
    num_heads = mix_weights.shape[0]
    out_s = gmat.shape[1]

    # Layers per grid step: amortize the ~0.35us/step overhead with bigger
    # contiguous DMA slabs while keeping the pipelined working set
    # (2x bf16 layer chunk + 2x bf16 gather matrix + resident f32 accumulator
    #  + [root]) under a budget safe for every generation's scoped-VMEM
    # default (v5e 16 MiB, v6e/v7x 32 MiB scoped / 64 MiB physical on v7x).
    if l_chunk is None:
        fixed = 2 * out_s * S * 2 + 2 * num_heads * out_s * H * 4 + 2 * H * 4
        per_layer = 2 * S * H * 2            # double-buffered bf16 layer slab
        l_chunk = int(max(1, min(L, (vmem_budget_bytes - fixed) // per_layer)))
    n_lc = -(-L // l_chunk)
    l_pad = n_lc * l_chunk
    guard_tail = (l_pad != L)

    # Head weights live whole in SMEM; zero-pad the layer axis so the
    # (guarded) tail chunk reads well-defined scalars.
    w = mix_weights.astype(jnp.float32)
    if guard_tail:
        w = jnp.pad(w, ((0, 0), (0, l_pad - L)))

    root2d = root_embedding.reshape(1, H).astype(jnp.float32)

    kernel = functools.partial(_fused_mix_gather_kernel,
                               num_layers=L, guard_tail=guard_tail)

    # TODO(synk): the (B, out_s_pad, S) one-hot matrix could be replaced by
    # scalar-prefetched row indices + an in-kernel iota compare; its block
    # index depends only on b, so it is DMA'd once per batch (not per layer)
    # and is a negligible fraction of HBM traffic at these shapes.
    return pl.pallas_call(
        kernel,
        out_shape=jax.ShapeDtypeStruct((num_heads, B, out_s, H), jnp.float32),
        grid=(B, n_lc),
        in_specs=[
            pl.BlockSpec(memory_space=pltpu.MemorySpace.SMEM),               # head weights
            pl.BlockSpec((None, out_s, S), lambda b, lc: (b, 0, 0)),         # gather one-hot (bf16)
            pl.BlockSpec((l_chunk, None, S, H), lambda b, lc: (lc, b, 0, 0)),  # layer chunk (bf16)
            pl.BlockSpec((1, H), lambda b, lc: (0, 0)),                      # [root] embedding
        ],
        out_specs=pl.BlockSpec((num_heads, None, out_s, H),
                               lambda b, lc: (0, b, 0, 0)),
        compiler_params=pltpu.CompilerParams(
            dimension_semantics=("parallel", "arbitrary")),
    )(w, gmat.astype(jnp.bfloat16), embedding_layers.astype(jnp.bfloat16),
      root2d)


# ----------------------------------------------------------------------------
# Wrapper.forward equivalent (eval mode).
# ----------------------------------------------------------------------------
def wrapper_forward(embedding_layers, original_token_mask, sent_lengths,
                    scalar_mix_params, root_embedding, output_ids,
                    max_orig_seq_len=None):
    L, B, S, H = embedding_layers.shape

    if max_orig_seq_len is None:
        # Data-dependent output shape (matches the PyTorch module exactly) —
        # forces a host sync + recompile per distinct value; prefer passing it.
        max_orig_seq_len = int(jnp.max(jnp.sum(original_token_mask, axis=1)))

    out_s = max_orig_seq_len + 1                 # +1 for the [root] slot
    out_s_pad = -(-out_s // 8) * 8               # sublane-aligned accumulator

    # Parameter glue: gamma * softmax(params) per head, stacked (num_heads, L).
    w = jnp.stack([
        scalar_mix_params[oid][1] * jax.nn.softmax(scalar_mix_params[oid][0])
        for oid in output_ids
    ]).astype(jnp.float32)

    # Index glue (matches Wrapper._process_embeddings): argsort permutation
    # moving original-token positions to the front, then a one-hot gather
    # matrix (exact in bf16) whose row 0 is zero (filled with [root] in-kernel);
    # padded rows (if any) are zero and sliced off after the call.
    inverted = 1 - original_token_mask
    overall = inverted * S + jnp.arange(S, dtype=original_token_mask.dtype)[None, :]
    perm = jnp.argsort(overall, axis=1).astype(jnp.int32)             # (B, S)
    sel = perm[:, :max_orig_seq_len]                                  # (B, max_orig)
    onehot = (sel[:, :, None] ==
              jnp.arange(S, dtype=jnp.int32)[None, None, :]).astype(jnp.bfloat16)
    pad_rows = out_s_pad - 1 - max_orig_seq_len
    gmat = jnp.concatenate(
        [jnp.zeros((B, 1, S), jnp.bfloat16), onehot,
         jnp.zeros((B, pad_rows, S), jnp.bfloat16)], axis=1)          # (B, out_s_pad, S)

    stacked = fused_mix_gather(embedding_layers, w, gmat, root_embedding)
    stacked = stacked[:, :, :out_s, :]           # strip sublane padding rows

    processed = {oid: stacked[i] for i, oid in enumerate(output_ids)}
    true_seq_lengths = sent_lengths + 1          # +1 for [root]
    return processed, true_seq_lengths


def _reference(embedding_layers, w, root, perm, max_orig):
    mixed = jnp.einsum("l,lbsh->bsh", w, embedding_layers)
    B, S, H = mixed.shape
    gathered = jnp.take_along_axis(
        mixed, jnp.broadcast_to(perm[:, :, None], (B, S, H)), axis=1)[:, :max_orig, :]
    root_exp = jnp.broadcast_to(root[None, None, :], (B, 1, H))
    return jnp.concatenate([root_exp, gathered], axis=1)


if __name__ == "__main__":
    # Small deterministic setup consistent with the module:
    #   L = num_transformer_layers + 1 = 5, batch B = 2 (keeps both v7x
    #   TensorCores busy), wordpiece seq S = 16, hidden H = 128 (lane-dense),
    #   two output heads sharing one backbone.
    L, B, S, H = 5, 2, 16, 128
    output_ids = ["heads", "labels"]

    key = jax.random.PRNGKey(0)
    k_layers, k_root, k_m0, k_m1 = jax.random.split(key, 4)

    # Synthetic stacked transformer hidden states.
    # TODO(synk): the BERT tokenizer (BertInputSequence) and the transformer
    # forward itself are external models; their outputs are synthesized here.
    embedding_layers = jax.random.normal(k_layers, (L, B, S, H), dtype=jnp.float32)

    # Original-token masks (first wordpiece of each original token = 1).
    mask_np = np.zeros((B, S), dtype=np.int32)
    mask_np[0, [1, 3, 4, 8, 9, 10, 11]] = 1    # sentence 0: 7 original tokens
    mask_np[1, [1, 2, 3, 5, 6]] = 1            # sentence 1: 5 original tokens
    original_token_mask = jnp.asarray(mask_np)
    sent_lengths = jnp.asarray(mask_np.sum(axis=1), dtype=jnp.int32)
    max_orig = int(mask_np.sum(axis=1).max())   # static, host-side (no device sync)

    # Deterministic parameter init (ScalarMixWithDropout params + gamma, root).
    scalar_mix_params = {
        "heads": (0.1 * jax.random.normal(k_m0, (L,), dtype=jnp.float32),
                  jnp.float32(1.0)),
        "labels": (0.1 * jax.random.normal(k_m1, (L,), dtype=jnp.float32),
                   jnp.float32(1.0)),
    }
    root_embedding = jax.random.normal(k_root, (H,), dtype=jnp.float32)

    processed, true_seq_lengths = wrapper_forward(
        embedding_layers, original_token_mask, sent_lengths,
        scalar_mix_params, root_embedding, output_ids,
        max_orig_seq_len=max_orig)
    jax.block_until_ready(processed)
    jax.block_until_ready(true_seq_lengths)

    # Cross-check against a pure-JAX f32 reference of the same math.
    # Tolerance is relaxed because the kernel streams the layer stack in bf16
    # (accumulation stays f32); the one-hot gather and [root] row are exact.
    inverted = 1 - original_token_mask
    overall = inverted * S + jnp.arange(S, dtype=jnp.int32)[None, :]
    perm = jnp.argsort(overall, axis=1).astype(jnp.int32)
    for oid in output_ids:
        params, gamma = scalar_mix_params[oid]
        wts = gamma * jax.nn.softmax(params)
        ref = _reference(embedding_layers, wts, root_embedding, perm, max_orig)
        np.testing.assert_allclose(np.asarray(processed[oid]), np.asarray(ref),
                                   rtol=2e-2, atol=2e-2)
    np.testing.assert_array_equal(np.asarray(true_seq_lengths),
                                  np.asarray(sent_lengths) + 1)

    print("KERNEL_OK")
</pallas_src>

<mosaic_0001>
module attributes {stable_mosaic.version = 11 : i64} {
  func.func @_fused_mix_gather_kernel(%arg0: i32, %arg1: i32, %arg2: memref<2x5xf32, #tpu.memory_space<smem>>, %arg3: memref<1x8x16xbf16, #tpu.memory_space<vmem>>, %arg4: memref<5x1x16x128xbf16, #tpu.memory_space<vmem>>, %arg5: memref<1x128xf32, #tpu.memory_space<vmem>>, %arg6: memref<2x1x8x128xf32, #tpu.memory_space<vmem>>) attributes {dimension_semantics = [#tpu.dimension_semantics<parallel>, #tpu.dimension_semantics<arbitrary>], iteration_bounds = array<i64: 2, 1>, scalar_prefetch = 0 : i64, scratch_operands = 0 : i64, tpu.core_type = #tpu.core_type<tc>, window_params = [{transform_indices = @transform_0, window_bounds = array<i64: 2, 5>}, {transform_indices = @transform_1, window_bounds = array<i64: 1, 8, 16>}, {transform_indices = @transform_2, window_bounds = array<i64: 5, 1, 16, 128>}, {pipeline_mode = #tpu.pipeline_mode<synchronous>, transform_indices = @transform_3, window_bounds = array<i64: 1, 128>}, {transform_indices = @transform_4, window_bounds = array<i64: 2, 1, 8, 128>}]} {
    %c0_i32 = arith.constant 0 : i32
    %0 = arith.cmpi eq, %arg1, %c0_i32 : i32
    %1 = arith.extui %0 : i1 to i32
    %c0_i32_0 = arith.constant 0 : i32
    %2 = arith.cmpi ne, %1, %c0_i32_0 : i32
    scf.if %2 {
      %cst_48 = arith.constant 0.000000e+00 : f32
      %91 = vector.broadcast %cst_48 : f32 to vector<2x8x128xf32>
      %c0_49 = arith.constant 0 : index
      %c0_50 = arith.constant 0 : index
      %c0_51 = arith.constant 0 : index
      %c0_52 = arith.constant 0 : index
      %92 = vector.load %arg6[%c0_49, %c0_50, %c0_51, %c0_52] : memref<2x1x8x128xf32, #tpu.memory_space<vmem>>, vector<2x1x8x128xf32>
      %93 = vector.shape_cast %92 : vector<2x1x8x128xf32> to vector<2x8x128xf32>
      %94 = vector.shape_cast %91 : vector<2x8x128xf32> to vector<2x1x8x128xf32>
      tpu.vector_store %arg6[%c0_49, %c0_50, %c0_51, %c0_52], %94 {strides = array<i32>} : memref<2x1x8x128xf32, #tpu.memory_space<vmem>>, vector<2x1x8x128xf32>,
      %c0_53 = arith.constant 0 : index
      %c0_54 = arith.constant 0 : index
      %95 = vector.load %arg5[%c0_53, %c0_54] : memref<1x128xf32, #tpu.memory_space<vmem>>, vector<1x128xf32>
      %96 = vector.shape_cast %95 : vector<1x128xf32> to vector<1x1x128xf32>
      %97 = vector.shape_cast %96 : vector<1x1x128xf32> to vector<1x1x128xf32>
      %98 = vector.broadcast %97 : vector<1x1x128xf32> to vector<2x1x128xf32>
      %c0_55 = arith.constant 0 : index
      %c0_56 = arith.constant 0 : index
      %c0_57 = arith.constant 0 : index
      %c0_58 = arith.constant 0 : index
      %99 = vector.load %arg6[%c0_55, %c0_56, %c0_57, %c0_58] : memref<2x1x8x128xf32, #tpu.memory_space<vmem>>, vector<2x1x1x128xf32>
      %100 = vector.shape_cast %99 : vector<2x1x1x128xf32> to vector<2x1x128xf32>
      %101 = vector.shape_cast %98 : vector<2x1x128xf32> to vector<2x1x1x128xf32>
      tpu.vector_store %arg6[%c0_55, %c0_56, %c0_57, %c0_58], %101 {strides = array<i32>} : memref<2x1x8x128xf32, #tpu.memory_space<vmem>>, vector<2x1x1x128xf32>,
    } else {
    }
    %c0 = arith.constant 0 : index
    %c0_1 = arith.constant 0 : index
    %c0_2 = arith.constant 0 : index
    %3 = vector.load %arg3[%c0, %c0_1, %c0_2] : memref<1x8x16xbf16, #tpu.memory_space<vmem>>, vector<1x8x16xbf16>
    %4 = vector.shape_cast %3 : vector<1x8x16xbf16> to vector<8x16xbf16>
    %cst = arith.constant 0.000000e+00 : f32
    %5 = vector.broadcast %cst : f32 to vector<8x128xf32>
    %cst_3 = arith.constant 0.000000e+00 : f32
    %6 = vector.broadcast %cst_3 : f32 to vector<8x128xf32>
    %c5_i32 = arith.constant 5 : i32
    %7 = arith.muli %arg1, %c5_i32 : i32
    %c0_i32_4 = arith.constant 0 : i32
    %8 = arith.addi %7, %c0_i32_4 : i32
    %c0_5 = arith.constant 0 : index
    %c0_6 = arith.constant 0 : index
    %c0_7 = arith.constant 0 : index
    %c0_8 = arith.constant 0 : index
    %9 = vector.load %arg4[%c0_5, %c0_6, %c0_7, %c0_8] : memref<5x1x16x128xbf16, #tpu.memory_space<vmem>>, vector<1x1x16x128xbf16>
    %10 = vector.shape_cast %9 : vector<1x1x16x128xbf16> to vector<16x128xbf16>
    %cst_9 = arith.constant dense<0.000000e+00> : vector<8x128xf32>
    %11 = tpu.matmul %4, %10, %cst_9 {dimension_numbers = #tpu.dot_dimension_numbers<[1], [0], [0], [1], [0, 0, 1, 1], [], []>} : vector<8x16xbf16>, vector<16x128xbf16>, vector<8x128xf32> -> vector<8x128xf32>
    %c0_10 = arith.constant 0 : index
    %12 = arith.index_cast %8 : i32 to index
    %13 = memref.load %arg2[%c0_10, %12] : memref<2x5xf32, #tpu.memory_space<smem>>
    %14 = vector.broadcast %13 : f32 to vector<8x128xf32>
    %15 = arith.mulf %14, %11 : vector<8x128xf32>
    %16 = arith.addf %5, %15 : vector<8x128xf32>
    %c1 = arith.constant 1 : index
    %17 = arith.index_cast %8 : i32 to index
    %18 = memref.load %arg2[%c1, %17] : memref<2x5xf32, #tpu.memory_space<smem>>
    %19 = vector.broadcast %18 : f32 to vector<8x128xf32>
    %20 = arith.mulf %19, %11 : vector<8x128xf32>
    %21 = arith.addf %6, %20 : vector<8x128xf32>
    %c5_i32_11 = arith.constant 5 : i32
    %22 = arith.muli %arg1, %c5_i32_11 : i32
    %c1_i32 = arith.constant 1 : i32
    %23 = arith.addi %22, %c1_i32 : i32
    %c1_12 = arith.constant 1 : index
    %c0_13 = arith.constant 0 : index
    %c0_14 = arith.constant 0 : index
    %c0_15 = arith.constant 0 : index
    %24 = vector.load %arg4[%c1_12, %c0_13, %c0_14, %c0_15] : memref<5x1x16x128xbf16, #tpu.memory_space<vmem>>, vector<1x1x16x128xbf16>
    %25 = vector.shape_cast %24 : vector<1x1x16x128xbf16> to vector<16x128xbf16>
    %cst_16 = arith.constant dense<0.000000e+00> : vector<8x128xf32>
    %26 = tpu.matmul %4, %25, %cst_16 {dimension_numbers = #tpu.dot_dimension_numbers<[1], [0], [0], [1], [0, 0, 1, 1], [], []>} : vector<8x16xbf16>, vector<16x128xbf16>, vector<8x128xf32> -> vector<8x128xf32>
    %c0_17 = arith.constant 0 : index
    %27 = arith.index_cast %23 : i32 to index
    %28 = memref.load %arg2[%c0_17, %27] : memref<2x5xf32, #tpu.memory_space<smem>>
    %29 = vector.broadcast %28 : f32 to vector<8x128xf32>
    %30 = arith.mulf %29, %26 : vector<8x128xf32>
    %31 = arith.addf %16, %30 : vector<8x128xf32>
    %c1_18 = arith.constant 1 : index
    %32 = arith.index_cast %23 : i32 to index
    %33 = memref.load %arg2[%c1_18, %32] : memref<2x5xf32, #tpu.memory_space<smem>>
    %34 = vector.broadcast %33 : f32 to vector<8x128xf32>
    %35 = arith.mulf %34, %26 : vector<8x128xf32>
    %36 = arith.addf %21, %35 : vector<8x128xf32>
    %c5_i32_19 = arith.constant 5 : i32
    %37 = arith.muli %arg1, %c5_i32_19 : i32
    %c2_i32 = arith.constant 2 : i32
    %38 = arith.addi %37, %c2_i32 : i32
    %c2 = arith.constant 2 : index
    %c0_20 = arith.constant 0 : index
    %c0_21 = arith.constant 0 : index
    %c0_22 = arith.constant 0 : index
    %39 = vector.load %arg4[%c2, %c0_20, %c0_21, %c0_22] : memref<5x1x16x128xbf16, #tpu.memory_space<vmem>>, vector<1x1x16x128xbf16>
    %40 = vector.shape_cast %39 : vector<1x1x16x128xbf16> to vector<16x128xbf16>
    %cst_23 = arith.constant dense<0.000000e+00> : vector<8x128xf32>
    %41 = tpu.matmul %4, %40, %cst_23 {dimension_numbers = #tpu.dot_dimension_numbers<[1], [0], [0], [1], [0, 0, 1, 1], [], []>} : vector<8x16xbf16>, vector<16x128xbf16>, vector<8x128xf32> -> vector<8x128xf32>
    %c0_24 = arith.constant 0 : index
    %42 = arith.index_cast %38 : i32 to index
    %43 = memref.load %arg2[%c0_24, %42] : memref<2x5xf32, #tpu.memory_space<smem>>
    %44 = vector.broadcast %43 : f32 to vector<8x128xf32>
    %45 = arith.mulf %44, %41 : vector<8x128xf32>
    %46 = arith.addf %31, %45 : vector<8x128xf32>
    %c1_25 = arith.constant 1 : index
    %47 = arith.index_cast %38 : i32 to index
    %48 = memref.load %arg2[%c1_25, %47] : memref<2x5xf32, #tpu.memory_space<smem>>
    %49 = vector.broadcast %48 : f32 to vector<8x128xf32>
    %50 = arith.mulf %49, %41 : vector<8x128xf32>
    %51 = arith.addf %36, %50 : vector<8x128xf32>
    %c5_i32_26 = arith.constant 5 : i32
    %52 = arith.muli %arg1, %c5_i32_26 : i32
    %c3_i32 = arith.constant 3 : i32
    %53 = arith.addi %52, %c3_i32 : i32
    %c3 = arith.constant 3 : index
    %c0_27 = arith.constant 0 : index
    %c0_28 = arith.constant 0 : index
    %c0_29 = arith.constant 0 : index
    %54 = vector.load %arg4[%c3, %c0_27, %c0_28, %c0_29] : memref<5x1x16x128xbf16, #tpu.memory_space<vmem>>, vector<1x1x16x128xbf16>
    %55 = vector.shape_cast %54 : vector<1x1x16x128xbf16> to vector<16x128xbf16>
    %cst_30 = arith.constant dense<0.000000e+00> : vector<8x128xf32>
    %56 = tpu.matmul %4, %55, %cst_30 {dimension_numbers = #tpu.dot_dimension_numbers<[1], [0], [0], [1], [0, 0, 1, 1], [], []>} : vector<8x16xbf16>, vector<16x128xbf16>, vector<8x128xf32> -> vector<8x128xf32>
    %c0_31 = arith.constant 0 : index
    %57 = arith.index_cast %53 : i32 to index
    %58 = memref.load %arg2[%c0_31, %57] : memref<2x5xf32, #tpu.memory_space<smem>>
    %59 = vector.broadcast %58 : f32 to vector<8x128xf32>
    %60 = arith.mulf %59, %56 : vector<8x128xf32>
    %61 = arith.addf %46, %60 : vector<8x128xf32>
    %c1_32 = arith.constant 1 : index
    %62 = arith.index_cast %53 : i32 to index
    %63 = memref.load %arg2[%c1_32, %62] : memref<2x5xf32, #tpu.memory_space<smem>>
    %64 = vector.broadcast %63 : f32 to vector<8x128xf32>
    %65 = arith.mulf %64, %56 : vector<8x128xf32>
    %66 = arith.addf %51, %65 : vector<8x128xf32>
    %c5_i32_33 = arith.constant 5 : i32
    %67 = arith.muli %arg1, %c5_i32_33 : i32
    %c4_i32 = arith.constant 4 : i32
    %68 = arith.addi %67, %c4_i32 : i32
    %c4 = arith.constant 4 : index
    %c0_34 = arith.constant 0 : index
    %c0_35 = arith.constant 0 : index
    %c0_36 = arith.constant 0 : index
    %69 = vector.load %arg4[%c4, %c0_34, %c0_35, %c0_36] : memref<5x1x16x128xbf16, #tpu.memory_space<vmem>>, vector<1x1x16x128xbf16>
    %70 = vector.shape_cast %69 : vector<1x1x16x128xbf16> to vector<16x128xbf16>
    %cst_37 = arith.constant dense<0.000000e+00> : vector<8x128xf32>
    %71 = tpu.matmul %4, %70, %cst_37 {dimension_numbers = #tpu.dot_dimension_numbers<[1], [0], [0], [1], [0, 0, 1, 1], [], []>} : vector<8x16xbf16>, vector<16x128xbf16>, vector<8x128xf32> -> vector<8x128xf32>
    %c0_38 = arith.constant 0 : index
    %72 = arith.index_cast %68 : i32 to index
    %73 = memref.load %arg2[%c0_38, %72] : memref<2x5xf32, #tpu.memory_space<smem>>
    %74 = vector.broadcast %73 : f32 to vector<8x128xf32>
    %75 = arith.mulf %74, %71 : vector<8x128xf32>
    %76 = arith.addf %61, %75 : vector<8x128xf32>
    %c1_39 = arith.constant 1 : index
    %77 = arith.index_cast %68 : i32 to index
    %78 = memref.load %arg2[%c1_39, %77] : memref<2x5xf32, #tpu.memory_space<smem>>
    %79 = vector.broadcast %78 : f32 to vector<8x128xf32>
    %80 = arith.mulf %79, %71 : vector<8x128xf32>
    %81 = arith.addf %66, %80 : vector<8x128xf32>
    %c0_40 = arith.constant 0 : index
    %c0_41 = arith.constant 0 : index
    %c0_42 = arith.constant 0 : index
    %c0_43 = arith.constant 0 : index
    %82 = vector.load %arg6[%c0_40, %c0_41, %c0_42, %c0_43] : memref<2x1x8x128xf32, #tpu.memory_space<vmem>>, vector<2x1x8x128xf32>
    %83 = vector.shape_cast %82 : vector<2x1x8x128xf32> to vector<2x8x128xf32>
    %84 = vector.shape_cast %76 : vector<8x128xf32> to vector<1x8x128xf32>
    %85 = vector.shape_cast %81 : vector<8x128xf32> to vector<1x8x128xf32>
    %86 = tpu.concatenate %84, %85 in 0 : vector<1x8x128xf32>, vector<1x8x128xf32> -> vector<2x8x128xf32>
    %87 = arith.addf %83, %86 : vector<2x8x128xf32>
    %c0_44 = arith.constant 0 : index
    %c0_45 = arith.constant 0 : index
    %c0_46 = arith.constant 0 : index
    %c0_47 = arith.constant 0 : index
    %88 = vector.load %arg6[%c0_44, %c0_45, %c0_46, %c0_47] : memref<2x1x8x128xf32, #tpu.memory_space<vmem>>, vector<2x1x8x128xf32>
    %89 = vector.shape_cast %88 : vector<2x1x8x128xf32> to vector<2x8x128xf32>
    %90 = vector.shape_cast %87 : vector<2x8x128xf32> to vector<2x1x8x128xf32>
    tpu.vector_store %arg6[%c0_44, %c0_45, %c0_46, %c0_47], %90 {strides = array<i32>} : memref<2x1x8x128xf32, #tpu.memory_space<vmem>>, vector<2x1x8x128xf32>,
    return
  }
  func.func @transform_0(%arg0: i32, %arg1: i32) -> (i32, i32) {
    %c0_i32 = arith.constant 0 : i32
    %c0_i32_0 = arith.constant 0 : i32
    %c0_i32_1 = arith.constant 0 : i32
    return %c0_i32, %c0_i32_0 : i32, i32
  }
  func.func @transform_1(%arg0: i32, %arg1: i32) -> (i32, i32, i32) {
    %c0_i32 = arith.constant 0 : i32
    %c0_i32_0 = arith.constant 0 : i32
    %c0_i32_1 = arith.constant 0 : i32
    return %arg0, %c0_i32, %c0_i32_0 : i32, i32, i32
  }
  func.func @transform_2(%arg0: i32, %arg1: i32) -> (i32, i32, i32, i32) {
    %c0_i32 = arith.constant 0 : i32
    %c0_i32_0 = arith.constant 0 : i32
    %c0_i32_1 = arith.constant 0 : i32
    return %arg1, %arg0, %c0_i32, %c0_i32_0 : i32, i32, i32, i32
  }
  func.func @transform_3(%arg0: i32, %arg1: i32) -> (i32, i32) {
    %c0_i32 = arith.constant 0 : i32
    %c0_i32_0 = arith.constant 0 : i32
    %c0_i32_1 = arith.constant 0 : i32
    return %c0_i32, %c0_i32_0 : i32, i32
  }
  func.func @transform_4(%arg0: i32, %arg1: i32) -> (i32, i32, i32, i32) {
    %c0_i32 = arith.constant 0 : i32
    %c0_i32_0 = arith.constant 0 : i32
    %c0_i32_1 = arith.constant 0 : i32
    %c0_i32_2 = arith.constant 0 : i32
    return %c0_i32, %arg0, %c0_i32_0, %c0_i32_1 : i32, i32, i32, i32
  }
}

</mosaic_0001>

<bundles_post_ra>
// kernel: tpu_custom_call.1
= control target key start
LH: loop header
LB: loop body
LE: loop exit
PB: predicated region body
PF: predicated region fallthrough
CT: control target
= control target key end

     0   :  { %s1383_s0 = inlined_call_operand.hbm [shape: f32[2,5], index: 0, kind: input, shape index: {}]   ;;  %s1384_s1 = inlined_call_operand.hbm [shape: bf16[2,8,16], index: 1, kind: input, shape index: {}]   ;;  %s1385_s2 = inlined_call_operand.hbm [shape: bf16[5,2,16,128], index: 2, kind: input, shape index: {}]   ;;  %s1386_s3 = inlined_call_operand.vmem [shape: f32[1,128], index: 3, kind: input, shape index: {}]   ;;  %s1387_s4 = inlined_call_operand.hbm [shape: f32[2,2,8,128], index: 4, kind: output, shape index: {}]  }
   0x1   :  { %1394 = sst [smem:[#allocation17_spill]] %s1383_s0 }
   0x2   :  { %1395 = sst [smem:[#allocation18_spill]] %s1384_s1 }
   0x3   :  { %9 = vsyncpa [#allocation5], 0 }
   0x4   :  { %10 = vsyncpa [#allocation3], 0 }
   0x5   :  { %12 = vsyncpa [#allocation3 + $0x1], 0 }
   0x6   :  { %13 = vsyncpa [#allocation8], 0 }
   0x7   :  { %15 = vsyncpa [#allocation8 + $0x1], 0 }
   0x8   :  { %16 = vsyncpa [#allocation4], 0 }
   0x9   :  { %18 = vsyncpa [#allocation4 + $0x1], 0  ;;  %s1139_s15 = smov 0   ;;  %s1141_s16 = smov 0  }
   0xa   :  { %s1143_s17 = smov 0   ;;  %s1145_s18 = smov 0  }
   0xb   :  { %s1147_s19 = smov 0   ;;  %s1149_s20 = smov 0  }
   0xc LB: > { %s785_s21 = sadd.s32 4294967295, %s1098_s20   ;;  %s786_s22 = sadd.s32 4294967294, %s1098_s20   ;;  %s1098_s20 = sphi %s1149_s20, %s24_s20   ;;  %s1094_s19 = sphi %s1147_s19, %s1414_s19   ;;  %s1090_s18 = sphi %s1145_s18, %s1413_s18   ;;  %s1086_s17 = sphi %s1143_s17, %s1412_s17   ;;  %s1082_s16 = sphi %s1141_s16, %s1411_s16   ;;  %s1078_s15 = sphi %s1139_s15, %s1410_s15  }
   0xd   : > { %s36_s23 = sadd.s32 1, %s1094_s19  ;;  %s64_s24 = sadd.s32 1, %s1086_s17 }
   0xe   : > { %p38_p0 = scmp.ge.s32.totalorder %s36_s23, 2  ;;  %p71_p1 = scmp.ne.s32.totalorder %s1086_s17, %s1082_s16 }
   0xf   : > { %p72_p2 = scmp.eq.s32.totalorder %s1098_s20, 0  ;;  %p77_p3 = scmp.ne.s32.totalorder %s1082_s16, %s1078_s15 }
  0x10   : > { %s1416_s23 = smov (%p38_p0, %s36_s23), 0  ;;  %p1184_p5 = scmp.eq.s32.totalorder %s785_s21, 0 }
  0x11   : > { %p1180_p4 = por %p72_p2, %p71_p1  ;;  %s61_s27 = ssub.s32 %s1094_s19, %s1416_s23 }
  0x12   : > { %s1397_s26 = scalar_select %p1184_p5, 1, 0 }
  0x13   : > { %p150_p6 = scmp.eq.s32.totalorder %s785_s21, 1  ;;  %p62_p7 = scmp.eq.s32.totalorder %s61_s27, 0 }
  0x14   : > { %p1192_p8 = por %p1184_p5, %p77_p3  ;;  %p156_p10 = scmp.eq.s32.totalorder %s786_s22, 1 }
  0x15   : > { %p1196_p9 = por %p150_p6, %p71_p1  ;;  %p787_p12 = scmp.ge.s32.totalorder %s1098_s20, 1 }
  0x16   : > { %s1398_s28 = scalar_select %p1192_p8, 1, 0 }
  0x17   : > { %s1399_s29 = scalar_select %p1196_p9, 1, 0 }
  0x18   : > { %s1201_s30 = scalar_select %p62_p7, %s1086_s17, %s64_s24  }
  0x19   : > { %p1203_p11 = por %p156_p10, %p77_p3  ;;  %p163_p13 = scmp.lt.s32.totalorder %s1098_s20, 3 }
  0x1a   : > { %s1402_s0 = sld [smem:[#allocation17_spill]] }
  0x1b   : > { %s1400_s5 = scalar_select %p1203_p11, 1, 0 }
  0x1c   : > { %p1209_p0 = pnand %p787_p12, %p163_p13 }
  0x1e   : > { %s1401_s6 = scalar_select %p1209_p0, 1, 0 }
  0x1f   : > { %p891_p2 = pneg %p1209_p0 }
  0x20   : > { %s967_s9 = scalar_lea.hbm %s1402_s0, 32 }
  0x21   : > { %p892_p1 = pnand %p891_p2, %p1184_p5  ;;  %p968_p3 = scmp.ne.s32.totalorder %s1402_s0, %s967_s9 }
  0x22   : > { %p974_p12 = scmp.lt.u32.totalorder %s967_s9, %s1402_s0 }
  0x23   : > { %p969_p6 = pneg %p892_p1 }
  0x25   : > { %p970_p7 = pnand %p969_p6, %p968_p3 }
  0x27   : > { %p971_p10 = pneg %p970_p7 }
  0x29   : > { %p976_p13 = pnand %p974_p12, %p971_p10 }
  0x2b   : > { %979 = shalt.err (!%p976_p13)
}
  0x2c   : > { %s1100_s14 = smov [#allocation2]   ;;  %p1388_p2 = scmp.ge.s32.totalorder %s1098_s20, 2 }
  0x2d   : > { %894 = dma.hbm_to_smem (!%p892_p1), %s1402_s0, 32, %s1100_s14, [#allocation5]  }
  0x2e   : > { %184 = sbr.rel (%p1388_p2) target bundleno = 89 (0x59), region = 24  ;;  %s1233_s24 = sand.u32 (!%p1388_p2), 1, %s1086_s17  }
  0x2f   : > { %s791_s27 = sshll.u32 (!%p1388_p2), %s1094_s19, 6  ;;  %s790_s7 = sshll.u32 (!%p1388_p2), %s1233_s24, 2 }
  0x30   : > { %s1403_s1 = sld [smem:[#allocation18_spill]] (!%p1388_p2)  ;;  %s192_s11 = scalar_lea.vmem (!%p1388_p2), [#allocation6], %s790_s7 }
  0x31   : > { %s199_s12 = sshll.u32 (!%p1388_p2), %s192_s11, 4  ;;  %s189_s13 = scalar_lea.sflag (!%p1388_p2), [#allocation3], %s1233_s24  ;;  %s200_s12 = int_to_ptr.vmem [resolvable:$true] %s199_s12 }
  0x36   : > { %s1240_s10 = scalar_lea.hbm %s1403_s1, %s791_s27  ;;  %s984_s0 = scalar_lea.hbm %s1403_s1, 128 }
  0x37   : > { %s980_s14 = scalar_lea.hbm %s1240_s10, 64  ;;  %p985_p7 = scmp.lt.u32.totalorder %s1240_s10, %s1403_s1 }
  0x38   : > { %p981_p1 = scmp.ne.s32.totalorder %s1240_s10, %s980_s14  ;;  %p986_p10 = scmp.lt.u32.totalorder %s984_s0, %s980_s14 }
  0x39   : > { %p988_p13 = scmp.lt.u32.totalorder %s980_s14, %s1240_s10 }
  0x3a   : > { %p982_p3 = pnand %p981_p1, %p1180_p4  ;;  %p987_p12 = por %p986_p10, %p985_p7 }
  0x3c   : > { %p983_p6 = pneg %p982_p3  ;;  %p989_p2 = por %p988_p13, %p987_p12 }
  0x3e   : > { %p990_p11 = pnand %p989_p2, %p983_p6 }
  0x40   : > { %993 = shalt.err (!%p990_p11)
}
  0x41   : > { %s994_s7 = scalar_lea.vmem %s200_s12, 64  ;;  %s1101_s9 = smov [#allocation6]  }
  0x42   : > { %p995_p9 = scmp.ne.s32.totalorder %s200_s12, %s994_s7  ;;  %s998_s11 = sshll.u32 %s1101_s9, 4  ;;  %s999_s11 = int_to_ptr.vmem [resolvable:$false] %s998_s11 }
  0x43   : > { %s1000_s21 = scalar_lea.vmem %s999_s11, 128  ;;  %p1001_p8 = scmp.lt.s32.totalorder %s200_s12, %s999_s11 }
  0x44   : > { %p996_p1 = pnand %p995_p9, %p1180_p4  ;;  %p1002_p5 = scmp.lt.s32.totalorder %s1000_s21, %s994_s7 }
  0x46   : > { %p997_p3 = pneg %p996_p1  ;;  %p1003_p0 = por %p1002_p5, %p1001_p8 }
  0x48   : > { %p1004_p7 = pnand %p1003_p0, %p997_p3 }
  0x4a   : > { %1007 = shalt.err (!%p1004_p7)
}
  0x4b   : > { %876 = dma.hbm_to_vmem [thread:$0]  (%p1180_p4), %s1240_s10, 64, %s200_s12, %s189_s13  }
  0x4c   : > { %s872_s0 = smul.u32 40, %s1233_s24  ;;  %s831_s14 = sshll.u32 %s1094_s19, 7 }
  0x4d   : > { %s877_s22 = scalar_select %p1180_p4, [#allocation0], [#allocation12] }
  0x4e   : > { %s219_s7 = scalar_lea.hbm %s1385_s2, %s831_s14  ;;  %s1102_s9 = smov 256  }
  0x4f   : > { %878 = sst [smem:[#allocation11]] (%p1180_p4), %s1102_s9  ;;  %s210_s12 = scalar_lea.vmem [#allocation7], %s872_s0 }
  0x50   : > { %s224_s10 = sld [smem:[%s877_s22]]   ;;  %s232_s13 = sshll.u32 %s210_s12, 4  ;;  %s233_s13 = int_to_ptr.vmem [resolvable:$true] %s232_s13 }
  0x51   : > { %s1103_s11 = smov 128   ;;  %s1104_s21 = smov 2  }
  0x52   : > { %879 = sst [smem:[#allocation11 + $0x1]] (%p1180_p4), %s1103_s11  ;;  %s1105_s1 = smov 64  }
  0x53   : > { %880 = sst [smem:[#allocation11 + $0x2]] (%p1180_p4), %s1104_s21  ;;  %s1106_s8 = smov 4  }
  0x54   : > { %881 = sst [smem:[#allocation11 + $0x3]] (%p1180_p4), %s1105_s1  ;;  %s207_s0 = scalar_lea.sflag [#allocation8], %s1233_s24 }
  0x55   : > { %882 = sst [smem:[#allocation11 + $0x4]] (%p1180_p4), %s1105_s1  ;;  %s1107_s27 = smov [#allocation10]  }
  0x56   : > { %s794_s14 = sshll.u32 %s224_s10, 26  ;;  %883 = sst [smem:[#allocation11 + $0x5]] (%p1180_p4), %s1106_s8 }
  0x57   : > { %s795_s22 = sadd.s32 134217728, %s794_s14 }
  0x58   : > { %884 = dma.general (%p1180_p4), %s219_s7, 640, %s233_s13, %s207_s0, %s1107_s27, [#allocation11], %s795_s22, 0  }
  0x59 PF: > { %p1404_p5 = scmp.ne.s32.totalorder %s1401_s6, 0 }
  0x5a   : > { %p1405_p8 = scmp.ne.s32.totalorder (!%p1404_p5), %s1397_s26, 0 }
  0x5b   : > { %257 = sbr.rel (%p1404_p5) target bundleno = 364 (0x16c), region = 36 }
  0x62   : > { %1061 = dma.done.wait (%p1405_p8), [#allocation5], 32  }
  0x63   : > { %1063 = vsyncadd (%p1405_p8), [#allocation5], 4294967264  ;;  %s1289_s1 = sand.u32 1, %s1082_s16   ;;  %p1406_p4 = scmp.ne.s32.totalorder %s1398_s28, 0 }
  0x64   : > { %s798_s24 = sshll.u32 %s1289_s1, 2  ;;  %s264_s9 = scalar_lea.sflag [#allocation3], %s1289_s1 }
  0x65   : > { %s267_s25 = scalar_lea.vmem [#allocation6], %s798_s24 }
  0x66   : > { %1065 = dma.done.wait (%p1406_p4), %s264_s9, 64  }
  0x67   : > { %1067 = vsyncadd (%p1406_p4), %s264_s9, 4294967232  ;;  %s873_s6 = smul.u32 40, %s1289_s1  ;;  %s273_s26 = scalar_lea.sflag [#allocation8], %s1289_s1 }
  0x69   : > { %s276_s7 = scalar_lea.vmem [#allocation7], %s873_s6 }
  0x6a   : > { %1069 = dma.done.wait (%p1406_p4), %s273_s26, 640  }
  0x6b   : > { %1071 = vsyncadd (%p1406_p4), %s273_s26, 4294966656 }
  0x6c   : > { %281 = sfence }
  0x6d   : > { %v962_v0 = vld [vmem:[%s276_s7] sm:$0xff]   ;;  %v1108_v1 = vmov 0.0   ;;  %v963_v2 = vld [vmem:[%s276_s7 + $0x8] sm:$0xff]   ;;  %vm1109_vm0 = vmmov 0   ;;  %v318_v3 = vld [vmem:[%s267_s25] sm:$0xf] }
  0x6e   : > { %842 = vmatprep.subr.bf16.mxu0 %v1108_v1  ;;  %848 = vmatprep.subr.bf16.mxu1 %v1108_v1  ;;  %vm328_vm1 = vcmask 130048   ;;  %v964_v4 = vld [vmem:[%s276_s7 + $0x10] sm:$0xff]   ;;  %v965_v5 = vld [vmem:[%s276_s7 + $0x18] sm:$0xff]   ;;  %v966_v6 = vld [vmem:[%s276_s7 + $0x20] sm:$0xff]   ;;  %s799_s28 = sshll.u32 %s1289_s1, 4  ;;  %s372_s11 = sld [smem:[#allocation2]] }
  0x6f   : > { %843 = vmatpush3.bf16.msra.mxu0 %v962_v0  ;;  %844 = vmatprep.mubr.msk.bf16.mxu0 %vm1109_vm0, %v1108_v1  ;;  %s1314_s10 = scalar_lea.vmem [#allocation9], %s799_s28  ;;  %v315_v7 = vld [vmem:[%s1386_s3] sm:$0x1]  ;;  %s802_s21 = sld [smem:[#allocation2 + $0x80]] }
  0x70   : > { %849 = vmatpush3.bf16.msra.mxu1 %v963_v2  ;;  %850 = vmatprep.mubr.msk.bf16.mxu1 %vm1109_vm0, %v1108_v1  ;;  %313 = vst [vmem:[%s1314_s10] sm:$0xff] %v1108_v1  ;;  %314 = vst [vmem:[%s1314_s10 + $0x8] sm:$0xff] %v1108_v1  ;;  %s807_s14 = sld [smem:[#allocation2 + $0x1]]  ;;  %s813_s22 = sld [smem:[#allocation2 + $0x2]] }
  0x71   : > { %854 = vmatprep.subr.bf16.mxu0 %v1108_v1  ;;  %860 = vmatprep.subr.bf16.mxu1 %v1108_v1  ;;  %316 = vst [vmem:[%s1314_s10] sm:$0x1] %v315_v7  ;;  %317 = vst [vmem:[%s1314_s10 + $0x8] sm:$0x1] %v315_v7  ;;  %s808_s8 = sld [smem:[#allocation2 + $0x81]]  ;;  %s814_s0 = sld [smem:[#allocation2 + $0x82]] }
  0x72   : > { %845 = vmatmul.mubr.msk.bf16.vlgmr.msra.gmra.mrb[0].mxu0 %vm328_vm1, %v318_v3  ;;  %s819_s27 = sld [smem:[#allocation2 + $0x3]]  ;;  %s825_s9 = sld [smem:[#allocation2 + $0x4]] }
  0x73   : > { %851 = vmatmul.mubr.msk.bf16.vlgmr.msra.gmra.mrb[0].mxu1 %vm328_vm1, %v318_v3  ;;  %855 = vmatpush3.bf16.msra.mxu0 %v964_v4  ;;  %s820_s24 = sld [smem:[#allocation2 + $0x83]]  ;;  %s826_s25 = sld [smem:[#allocation2 + $0x84]] }
  0x74   : > { %856 = vmatprep.mubr.msk.bf16.mxu0 %vm1109_vm0, %v1108_v1  ;;  %861 = vmatpush3.bf16.msra.mxu1 %v965_v5  ;;  %v373_v8 = vstv %s372_s11  ;;  %s828_s6 = sshll.u32 %s1090_s18, 7  ;;  %s666_s26 = sshll.u32 %s1314_s10, 4  ;;  %s1332_s26 = int_to_ptr.vmem [resolvable:$true] %s666_s26 }
  0x75   : > { %866 = vmatprep.subr.bf16.mxu0 %v1108_v1  ;;  %862 = vmatprep.mubr.msk.bf16.mxu1 %vm1109_vm0, %v1108_v1  ;;  %v384_v9 = vstv %s802_s21  ;;  %s1330_s12 = scalar_lea.hbm %s1387_s4, %s828_s6  ;;  %s654_s18 = scalar_lea.sflag [#allocation4], %s1289_s1 }
  0x76   : > { %v438_v10 = vstv %s807_s14  ;;  %v503_v26 = vstv %s813_s22  ;;  %s1008_s13 = scalar_lea.vmem %s1332_s26, 256  ;;  %p1407_p11 = scmp.ne.s32.totalorder %s1399_s29, 0 }
  0x77   : > { %v449_v11 = vstv %s808_s8  ;;  %v514_v27 = vstv %s814_s0  ;;  %p1009_p9 = scmp.ne.s32.totalorder %s1332_s26, %s1008_s13  ;;  %s1110_s11 = smov [#allocation9]  }
  0x78   : > { %v568_v28 = vstv %s819_s27  ;;  %v633_v46 = vstv %s825_s9  ;;  %v647_v52 = vld [vmem:[%s1314_s10] sm:$0xff]  ;;  %v648_v53 = vld [vmem:[%s1314_s10 + $0x8] sm:$0xff]  ;;  %s1012_s21 = sshll.u32 %s1110_s11, 4  ;;  %s1013_s21 = int_to_ptr.vmem [resolvable:$false] %s1012_s21 }
  0x79   : > { %v579_v29 = vstv %s820_s24  ;;  %v644_v47 = vstv %s826_s25  ;;  %p1010_p0 = pnand %p1009_p9, %p1407_p11  ;;  %s1014_s14 = scalar_lea.vmem %s1013_s21, 512 }
  0x7a   : > { %857 = vmatmul.mubr.msk.bf16.vlgmr.msra.gmra.mrb[4].mxu0 %vm328_vm1, %v318_v3  ;;  %p1015_p6 = scmp.lt.s32.totalorder %s1332_s26, %s1013_s21  ;;  %p1016_p10 = scmp.lt.s32.totalorder %s1014_s14, %s1008_s13 }
  0x7b   : > { %867 = vmatpush3.bf16.msra.mxu0 %v966_v6  ;;  %863 = vmatmul.mubr.msk.bf16.vlgmr.msra.gmra.mrb[4].mxu1 %vm328_vm1, %v318_v3  ;;  %p1011_p2 = pneg %p1010_p0 }
  0x7c   : > { %868 = vmatprep.mubr.msk.bf16.mxu0 %vm1109_vm0, %v1108_v1  ;;  %p1017_p12 = por %p1016_p10, %p1015_p6 }
  0x7e   : > { %p1018_p13 = pnand %p1017_p12, %p1011_p2 }
  0x82   : > { %869 = vmatmul.mubr.msk.bf16.vlgmr.msra.gmra.mrb[8].mxu0 %vm328_vm1, %v318_v3 }
 0x145   : > { %v366_v12 = vpop.f32.mrb[0].mxu0 }
 0x146   : > { %v374_v13 = vmul.f32 %v373_v8, %v366_v12  ;;  %v385_v14 = vmul.f32 %v384_v9, %v366_v12  ;;  %v846_v15 = vpop.f32.mrb[1].mxu0  ;;  %v431_v16 = vpop.f32.mrb[0].mxu1 }
 0x147   : > { %v439_v17 = vmul.f32 %v438_v10, %v431_v16  ;;  %v450_v18 = vmul.f32 %v449_v11, %v431_v16  ;;  %v369_v19 = vpop.f32.mrb[2].mxu0  ;;  %v852_v20 = vpop.f32.mrb[1].mxu1 }
 0x148   : > { %v847_v21 = vpop.f32.mrb[3].mxu0  ;;  %v434_v22 = vpop.f32.mrb[2].mxu1 }
 0x149   : > { %v440_v23 = vadd.f32 %v439_v17, %v374_v13  ;;  %v451_v24 = vadd.f32 %v450_v18, %v385_v14  ;;  %v853_v25 = vpop.f32.mrb[3].mxu1 }
 0x14d   : > { %v496_v30 = vpop.f32.mrb[4].mxu0 }
 0x14e   : > { %v504_v31 = vmul.f32 %v503_v26, %v496_v30  ;;  %v515_v32 = vmul.f32 %v514_v27, %v496_v30  ;;  %v858_v33 = vpop.f32.mrb[5].mxu0  ;;  %v561_v34 = vpop.f32.mrb[4].mxu1 }
 0x14f   : > { %v499_v35 = vpop.f32.mrb[6].mxu0  ;;  %v569_v36 = vmul.f32 %v568_v28, %v561_v34  ;;  %v580_v37 = vmul.f32 %v579_v29, %v561_v34  ;;  %v864_v38 = vpop.f32.mrb[5].mxu1 }
 0x150   : > { %v505_v39 = vadd.f32 %v504_v31, %v440_v23  ;;  %v516_v40 = vadd.f32 %v515_v32, %v451_v24  ;;  %v859_v41 = vpop.f32.mrb[7].mxu0  ;;  %v564_v42 = vpop.f32.mrb[6].mxu1 }
 0x151   : > { %v865_v43 = vpop.f32.mrb[7].mxu1 }
 0x152   : > { %v570_v44 = vadd.f32 %v569_v36, %v505_v39  ;;  %v581_v45 = vadd.f32 %v580_v37, %v516_v40 }
 0x155   : > { %v626_v48 = vpop.f32.mrb[8].mxu0 }
 0x156   : > { %v634_v49 = vmul.f32 %v633_v46, %v626_v48  ;;  %v645_v50 = vmul.f32 %v644_v47, %v626_v48  ;;  %v870_v51 = vpop.f32.mrb[9].mxu0 }
 0x157   : > { %v629_v54 = vpop.f32.mrb[10].mxu0 }
 0x158   : > { %v635_v55 = vadd.f32 %v634_v49, %v570_v44  ;;  %v646_v56 = vadd.f32 %v645_v50, %v581_v45  ;;  %v871_v57 = vpop.f32.mrb[11].mxu0 }
 0x15a   : > { %v649_v58 = vadd.f32 %v647_v52, %v635_v55  ;;  %v650_v59 = vadd.f32 %v648_v53, %v646_v56 }
 0x15c   : > { %651 = vst [vmem:[%s1314_s10] sm:$0xff] %v649_v58  ;;  %652 = vst [vmem:[%s1314_s10 + $0x8] sm:$0xff] %v650_v59 }
 0x15d   : > { %1021 = shalt.err (!%p1018_p13)
}
 0x15e   : > { %s1022_s10 = scalar_lea.hbm %s1330_s12, 256  ;;  %s1026_s0 = scalar_lea.hbm %s1387_s4, 512 }
 0x15f   : > { %p1023_p1 = scmp.ne.s32.totalorder %s1330_s12, %s1022_s10  ;;  %p1027_p5 = scmp.lt.u32.totalorder %s1330_s12, %s1387_s4 }
 0x160   : > { %p1028_p8 = scmp.lt.u32.totalorder %s1026_s0, %s1022_s10  ;;  %p1030_p9 = scmp.lt.u32.totalorder %s1022_s10, %s1330_s12 }
 0x161   : > { %p1024_p3 = pnand %p1023_p1, %p1407_p11 }
 0x162   : > { %p1029_p4 = por %p1028_p8, %p1027_p5 }
 0x163   : > { %p1025_p7 = pneg %p1024_p3 }
 0x164   : > { %p1031_p0 = por %p1030_p9, %p1029_p4 }
 0x166   : > { %p1032_p2 = pnand %p1031_p0, %p1025_p7 }
 0x168   : > { %1035 = shalt.err (!%p1032_p2)
}
 0x169   : > { %s1111_s9 = smov 128   ;;  %s1112_s25 = smov 256  }
 0x16a   : > { %s1113_s6 = smov 8  }
 0x16b   : > { %889 = dma.vmem_to_hbm [thread:$0]  (%p1407_p11), %s1332_s26, 256, %s1330_s12, %s654_s18, %s1111_s9, %s1112_s25, %s1113_s6  }
 0x16c PF: > { %s681_s7 = sand.u32 1, %s1078_s15   ;;  %p1408_p6 = scmp.ne.s32.totalorder %s1400_s5, 0 }
 0x16d   : > { %p1409_p10 = scmp.ge.s32.totalorder %s1098_s20, 2  ;;  %s682_s28 = scalar_lea.sflag [#allocation4], %s681_s7 }
 0x16f   : > { %p896_p12 = pnand %p1409_p10, %p1408_p6 }
 0x171   : > { %1073 = dma.done.wait (!%p896_p12), %s682_s28, 256  }
 0x172   : > { %1075 = vsyncadd (!%p896_p12), %s682_s28, 4294967040  ;;  %s24_s20 = sadd.s32 1, %s1098_s20   ;;  %s1410_s15 = smov %s1082_s16 }
 0x173   : > { %p21_p13 = scmp.ge.s32.totalorder %s24_s20, 4   ;;  %s1411_s16 = smov %s1086_s17 }
 0x174   : > { %s1412_s17 = smov %s1201_s30  ;;  %s1413_s18 = smov %s1094_s19 }
 0x175   : > { %s1414_s19 = smov %s1416_s23  ;;  %23 = sbr.rel (!%p21_p13) target bundleno = 12 (0xc), region = 112 }
 0x17c   :  { %687 = vsyncpa [#allocation3], 1 }
 0x17d   :  { %689 = vsyncpa [#allocation3 + $0x1], 1 }
 0x17e   :  { %690 = vsyncpa [#allocation8], 1 }
 0x17f   :  { %692 = vsyncpa [#allocation8 + $0x1], 1 }
 0x180   :  { %693 = vsyncpa [#allocation4], 1 }
 0x181   :  { %695 = vsyncpa [#allocation4 + $0x1], 1 }
 0x182   :  { %696 = vsyncpa [#allocation5], 1 }
 0x183   :  { %698 = vsyncpa [#allocation5 + $0x1], 1 }

</bundles_post_ra>
